<compile_context>
chip_gen: v7x
topology: tpu7x:2x2x1
jax: 0.10.0
libtpu: 0.0.40
codegen_flags: <defaults>
</compile_context>

<pallas_src>
import functools
import math

import jax
import jax.numpy as jnp
from jax.experimental import pallas as pl
from jax.experimental.pallas import tpu as pltpu


LN_EPS = 1e-5


def _patch_merge_kernel(xe_ref, xo_ref, wt_ref, wb_ref, wsum_ref, bias_ref,
                        o_ref):
    """Fused LayerNorm(4C) + Linear(4C -> 2C) on one row block.

    xe_ref : (th, W2, 2C)  even-h slab  == concat rows [0, 2C)  of the weight
    xo_ref : (th, W2, 2C)  odd-h  slab  == concat rows [2C, 4C) of the weight
    wt_ref : (2C, 2C)      gamma-folded weight rows [0, 2C)   (native dtype)
    wb_ref : (2C, 2C)      gamma-folded weight rows [2C, 4C)  (native dtype)
    wsum_ref: (1, 2C)      column sums of the folded (cast) weight, f32
    bias_ref: (1, 2C)      beta @ W + bias, f32
    o_ref  : (th * W2, 2C)

    NOTE: all math here is strictly per output row, so garbage rows in a
    ragged last block only pollute output rows Pallas never writes back to
    HBM.  Do not introduce any cross-row reduction into this kernel.
    """
    rows = o_ref.shape[0]
    k = xe_ref.shape[-1]                      # 2C
    inv_feat = 1.0 / float(2 * k)             # 1 / 4C

    # (th, W2, 2C) -> (th*W2, 2C): collapses leading dims only; the lane dim
    # is untouched, so this is a cheap (usually free) VMEM relayout.
    xe = xe_ref[...].reshape(rows, k)
    xo = xo_ref[...].reshape(rows, k)

    # ---- one-pass LayerNorm statistics over the virtual 4C axis (f32) ----
    xef = xe.astype(jnp.float32)
    xof = xo.astype(jnp.float32)
    s = xef.sum(-1, keepdims=True) + xof.sum(-1, keepdims=True)
    ssq = (xef * xef).sum(-1, keepdims=True) + (xof * xof).sum(-1, keepdims=True)
    mean = s * inv_feat
    var = jnp.maximum(ssq * inv_feat - mean * mean, 0.0)
    rstd = jax.lax.rsqrt(var + LN_EPS)

    # ---- projection on raw (native-dtype) activations, LN applied after ----
    #   ((x - mean) * rstd) @ W == rstd * (x @ W) - (rstd * mean) * colsum(W)
    acc = (jnp.dot(xe, wt_ref[...], preferred_element_type=jnp.float32)
           + jnp.dot(xo, wb_ref[...], preferred_element_type=jnp.float32))

    out = acc * rstd - (mean * rstd) * wsum_ref[...] + bias_ref[...]
    o_ref[...] = out.astype(o_ref.dtype)


def _sublane_pack(itemsize):
    return {4: 8, 2: 16, 1: 32}.get(itemsize, 8)


def _vmem_budget():
    """(tiling budget, scoped vmem limit) in bytes, per TPU generation."""
    cap = 0
    try:
        cap = int(getattr(pltpu.get_tpu_info(), "vmem_capacity_bytes", 0) or 0)
    except Exception:
        cap = 0
    if cap <= 0:
        cap = 64 * 1024 * 1024                       # conservative default
    if cap <= 80 * 1024 * 1024:                      # v7x-class: 64 MiB VMEM
        return 22 * 1024 * 1024, 40 * 1024 * 1024
    return 80 * 1024 * 1024, 100 * 1024 * 1024       # v5e / v6e: 128 MiB VMEM


def _pick_th(n_rows, w2, c, itemsize, budget, resident, rows_max):
    """Number of (B*H2) super-rows processed per grid step."""
    c2 = 2 * c
    # Per output row: double-buffered in/out DMA buffers + native in-kernel
    # copies (itemsize) + f32 intermediates (LN-stat casts, acc, out).
    per_row = (4 + 2 + 2) * c2 * itemsize + 4 * c2 * 4
    avail = max(budget - resident, per_row * w2)
    th = max(1, min(n_rows, max(1, rows_max // w2), avail // (per_row * w2)))
    # Keep >= 2 grid steps so the "parallel" axis can be sharded across both
    # v7x TensorCores (free on single-TC v5e/v6e).
    if n_rows >= 2:
        th = min(th, -(-n_rows // 2))
    # The output block has th*w2 rows; prefer the dtype's sublane packing,
    # require at least a multiple of 8 (hard layout rule unless the block
    # covers the whole array).
    for pack in (_sublane_pack(itemsize), 8):
        mult = pack // math.gcd(w2, pack)
        if th >= mult:
            return (th // mult) * mult
    # Tiny problem: fall back to a single block spanning all rows.
    return n_rows


@functools.partial(jax.jit, static_argnames=("rows_max",))
def patch_merge(x, gamma, beta, w, bias, *, rows_max=1024):
    """Swin PatchMerge forward.

    x     : (B, H, W, C)
    gamma : (4C,)   LayerNorm scale
    beta  : (4C,)   LayerNorm shift
    w     : (4C, 2C) reduction weight (transposed vs. torch.nn.Linear.weight)
    bias  : (2C,)   reduction bias
    returns (B, ceil(H/2), ceil(W/2), 2C), dtype of x
    """
    B, H, W, C = x.shape
    C2 = 2 * C

    # Spatial pad to even H/W (matches F.pad in the reference module).
    if (H % 2) or (W % 2):
        x = jnp.pad(x, ((0, 0), (0, H % 2), (0, W % 2), (0, 0)))
    Hp, Wp = x.shape[1], x.shape[2]
    H2, W2 = Hp // 2, Wp // 2
    R = B * H2                    # "super rows": one per (batch, h2)
    N = R * W2                    # output rows

    # Free, contiguous reshape: [row, h-parity, w2, (even-w C | odd-w C)].
    # No copy of the padded input is materialized for the 2x2 gather; the
    # kernel's BlockSpecs pull the two parity slabs straight from HBM.
    x4 = x.reshape(R, 2, W2, C2)

    # Fold the LayerNorm affine into the projection (once, in f32):
    #   LN(y) @ W + b == ((y-mean)*rstd) @ (gamma[:,None]*W) + (beta @ W + b)
    f32 = jnp.float32
    w_f = w.astype(f32) * gamma.astype(f32)[:, None]               # (4C, 2C)
    bias_f = beta.astype(f32) @ w.astype(f32) + bias.astype(f32)   # (2C,)

    w_k = w_f.astype(x.dtype)                                      # MXU dtype
    wsum = w_k.astype(f32).sum(axis=0, keepdims=True)              # (1, 2C) f32
    bias2d = bias_f.reshape(1, C2)                                 # (1, 2C) f32
    w_top = w_k[:C2, :]          # concat rows [0, 2C)  == even-h slab
    w_bot = w_k[C2:, :]          # concat rows [2C, 4C) == odd-h slab

    itemsize = jnp.dtype(x.dtype).itemsize
    budget, vmem_limit = _vmem_budget()

    # Resident operands: single-buffer them only when they are large enough
    # to matter for VMEM (constant index_map => extra buffers save no DMA).
    resident_mode = {}
    w_bufs = 2
    if C >= 256:
        resident_mode = dict(pipeline_mode=pl.Buffered(1))
        w_bufs = 1
    resident_bytes = w_bufs * 2 * C2 * C2 * itemsize + 2 * 2 * C2 * 4

    th = _pick_th(R, W2, C, itemsize, budget, resident_bytes, rows_max)
    rows_blk = th * W2
    grid = (pl.cdiv(R, th),)

    out_flat = pl.pallas_call(
        _patch_merge_kernel,
        out_shape=jax.ShapeDtypeStruct((N, C2), x.dtype),
        grid=grid,
        in_specs=[
            # even-h slab: x4[i*th:(i+1)*th, 0, :, :]
            pl.BlockSpec((th, None, W2, C2), lambda i: (i, 0, 0, 0)),
            # odd-h slab:  x4[i*th:(i+1)*th, 1, :, :]
            pl.BlockSpec((th, None, W2, C2), lambda i: (i, 1, 0, 0)),
            pl.BlockSpec((C2, C2), lambda i: (0, 0), **resident_mode),
            pl.BlockSpec((C2, C2), lambda i: (0, 0), **resident_mode),
            pl.BlockSpec((1, C2), lambda i: (0, 0), **resident_mode),
            pl.BlockSpec((1, C2), lambda i: (0, 0), **resident_mode),
        ],
        out_specs=pl.BlockSpec((rows_blk, C2), lambda i: (i, 0)),
        compiler_params=pltpu.CompilerParams(
            dimension_semantics=("parallel",),
            vmem_limit_bytes=int(vmem_limit)),
    )(x4, x4, w_top, w_bot, wsum, bias2d)

    return out_flat.reshape(B, H2, W2, C2)


def _reference(x, gamma, beta, w, bias):
    """Pure-JAX (f32) reference faithful to the PyTorch module."""
    B, H, W, C = x.shape
    x = jnp.pad(x, ((0, 0), (0, H % 2), (0, W % 2), (0, 0)))
    x1 = x[:, 0::2, 0::2, :]
    x2 = x[:, 0::2, 1::2, :]
    x3 = x[:, 1::2, 0::2, :]
    x4 = x[:, 1::2, 1::2, :]
    m = jnp.concatenate([x1, x2, x3, x4], axis=-1).astype(jnp.float32)
    mean = jnp.mean(m, axis=-1, keepdims=True)
    var = jnp.mean((m - mean) ** 2, axis=-1, keepdims=True)
    y = ((m - mean) * jax.lax.rsqrt(var + LN_EPS)
         * gamma.astype(jnp.float32) + beta.astype(jnp.float32))
    return y @ w.astype(jnp.float32) + bias.astype(jnp.float32)


if __name__ == "__main__":
    key = jax.random.PRNGKey(0)
    k_x, k_g, k_b, k_w, k_c, k_x2, k_x3, k_w3 = jax.random.split(key, 8)

    # ---- f32, even spatial extents -------------------------------------
    B, H, W, C = 2, 16, 16, 32           # emb_dim = 32
    C4, C2 = 4 * C, 2 * C
    x = jax.random.normal(k_x, (B, H, W, C), dtype=jnp.float32)
    gamma = 1.0 + 0.1 * jax.random.normal(k_g, (C4,), dtype=jnp.float32)
    beta = 0.05 * jax.random.normal(k_b, (C4,), dtype=jnp.float32)
    w = jax.random.normal(k_w, (C4, C2), dtype=jnp.float32) / jnp.sqrt(1.0 * C4)
    bias = 0.01 * jax.random.normal(k_c, (C2,), dtype=jnp.float32)

    out = jax.block_until_ready(patch_merge(x, gamma, beta, w, bias))
    ref = _reference(x, gamma, beta, w, bias)
    assert out.shape == (B, H // 2, W // 2, C2), out.shape
    err = float(jnp.max(jnp.abs(out.astype(jnp.float32) - ref)))
    assert err < 1e-3, err

    # ---- f32, odd spatial extents: exercises the F.pad path and a ragged
    # last row block (B*H2 = 5 super-rows split into blocks of 3) ----------
    x_odd = jax.random.normal(k_x2, (1, 9, 15, C), dtype=jnp.float32)
    out_odd = jax.block_until_ready(patch_merge(x_odd, gamma, beta, w, bias))
    ref_odd = _reference(x_odd, gamma, beta, w, bias)
    assert out_odd.shape == (1, 5, 8, C2), out_odd.shape
    err_odd = float(jnp.max(jnp.abs(out_odd.astype(jnp.float32) - ref_odd)))
    assert err_odd < 1e-3, err_odd

    # ---- bf16 activations/weights (MXU-native path), tolerance-checked
    # against the f32 reference (review correctness concern) ---------------
    Cb = 64
    C4b, C2b = 4 * Cb, 2 * Cb
    xb = jax.random.normal(k_x3, (2, 32, 32, Cb),
                           dtype=jnp.float32).astype(jnp.bfloat16)
    gb = 1.0 + 0.1 * jax.random.normal(k_g, (C4b,), dtype=jnp.float32)
    bb = 0.05 * jax.random.normal(k_b, (C4b,), dtype=jnp.float32)
    wb = jax.random.normal(k_w3, (C4b, C2b), dtype=jnp.float32) / jnp.sqrt(1.0 * C4b)
    cb = 0.01 * jax.random.normal(k_c, (C2b,), dtype=jnp.float32)

    out_bf16 = jax.block_until_ready(patch_merge(xb, gb, bb, wb, cb))
    ref_bf16 = _reference(xb, gb, bb, wb, cb)
    assert out_bf16.dtype == jnp.bfloat16
    assert out_bf16.shape == (2, 16, 16, C2b), out_bf16.shape
    err_bf16 = float(jnp.max(jnp.abs(out_bf16.astype(jnp.float32) - ref_bf16)))
    assert err_bf16 < 1e-1, err_bf16

    print("KERNEL_OK")
</pallas_src>

<mosaic_0001>
module attributes {stable_mosaic.version = 11 : i64} {
  func.func @_patch_merge_kernel(%arg0: i32, %arg1: memref<8x1x8x64xf32, #tpu.memory_space<vmem>>, %arg2: memref<8x1x8x64xf32, #tpu.memory_space<vmem>>, %arg3: memref<64x64xf32, #tpu.memory_space<vmem>>, %arg4: memref<64x64xf32, #tpu.memory_space<vmem>>, %arg5: memref<1x64xf32, #tpu.memory_space<vmem>>, %arg6: memref<1x64xf32, #tpu.memory_space<vmem>>, %arg7: memref<64x64xf32, #tpu.memory_space<vmem>>) attributes {dimension_semantics = [#tpu.dimension_semantics<parallel>], iteration_bounds = array<i64: 2>, scalar_prefetch = 0 : i64, scratch_operands = 0 : i64, tpu.core_type = #tpu.core_type<tc>, window_params = [{transform_indices = @transform_0, window_bounds = array<i64: 8, 1, 8, 64>}, {transform_indices = @transform_1, window_bounds = array<i64: 8, 1, 8, 64>}, {pipeline_mode = #tpu.pipeline_mode<synchronous>, transform_indices = @transform_2, window_bounds = array<i64: 64, 64>}, {pipeline_mode = #tpu.pipeline_mode<synchronous>, transform_indices = @transform_3, window_bounds = array<i64: 64, 64>}, {pipeline_mode = #tpu.pipeline_mode<synchronous>, transform_indices = @transform_4, window_bounds = array<i64: 1, 64>}, {pipeline_mode = #tpu.pipeline_mode<synchronous>, transform_indices = @transform_5, window_bounds = array<i64: 1, 64>}, {transform_indices = @transform_6, window_bounds = array<i64: 64, 64>}]} {
    %c0 = arith.constant 0 : index
    %c0_0 = arith.constant 0 : index
    %c0_1 = arith.constant 0 : index
    %c0_2 = arith.constant 0 : index
    %0 = vector.load %arg1[%c0, %c0_0, %c0_1, %c0_2] : memref<8x1x8x64xf32, #tpu.memory_space<vmem>>, vector<8x1x8x64xf32>
    %1 = vector.shape_cast %0 : vector<8x1x8x64xf32> to vector<8x8x64xf32>
    %2 = vector.shape_cast %1 : vector<8x8x64xf32> to vector<64x64xf32>
    %c0_3 = arith.constant 0 : index
    %c0_4 = arith.constant 0 : index
    %c0_5 = arith.constant 0 : index
    %c0_6 = arith.constant 0 : index
    %3 = vector.load %arg2[%c0_3, %c0_4, %c0_5, %c0_6] : memref<8x1x8x64xf32, #tpu.memory_space<vmem>>, vector<8x1x8x64xf32>
    %4 = vector.shape_cast %3 : vector<8x1x8x64xf32> to vector<8x8x64xf32>
    %5 = vector.shape_cast %4 : vector<8x8x64xf32> to vector<64x64xf32>
    %cst = arith.constant dense<0.000000e+00> : vector<64xf32>
    %6 = vector.multi_reduction <add>, %2, %cst [1] : vector<64x64xf32> to vector<64xf32>
    %7 = vector.shape_cast %6 : vector<64xf32> to vector<64x1xf32>
    %cst_7 = arith.constant dense<0.000000e+00> : vector<64xf32>
    %8 = vector.multi_reduction <add>, %5, %cst_7 [1] : vector<64x64xf32> to vector<64xf32>
    %9 = vector.shape_cast %8 : vector<64xf32> to vector<64x1xf32>
    %10 = arith.addf %7, %9 : vector<64x1xf32>
    %11 = arith.mulf %2, %2 : vector<64x64xf32>
    %cst_8 = arith.constant dense<0.000000e+00> : vector<64xf32>
    %12 = vector.multi_reduction <add>, %11, %cst_8 [1] : vector<64x64xf32> to vector<64xf32>
    %13 = vector.shape_cast %12 : vector<64xf32> to vector<64x1xf32>
    %14 = arith.mulf %5, %5 : vector<64x64xf32>
    %cst_9 = arith.constant dense<0.000000e+00> : vector<64xf32>
    %15 = vector.multi_reduction <add>, %14, %cst_9 [1] : vector<64x64xf32> to vector<64xf32>
    %16 = vector.shape_cast %15 : vector<64xf32> to vector<64x1xf32>
    %17 = arith.addf %13, %16 : vector<64x1xf32>
    %cst_10 = arith.constant 7.812500e-03 : f32
    %18 = vector.broadcast %cst_10 : f32 to vector<64x1xf32>
    %19 = arith.mulf %10, %18 : vector<64x1xf32>
    %cst_11 = arith.constant 7.812500e-03 : f32
    %20 = vector.broadcast %cst_11 : f32 to vector<64x1xf32>
    %21 = arith.mulf %17, %20 : vector<64x1xf32>
    %22 = arith.mulf %19, %19 : vector<64x1xf32>
    %23 = arith.subf %21, %22 : vector<64x1xf32>
    %cst_12 = arith.constant 0.000000e+00 : f32
    %24 = vector.broadcast %cst_12 : f32 to vector<64x1xf32>
    %25 = arith.maximumf %23, %24 : vector<64x1xf32>
    %cst_13 = arith.constant 9.99999974E-6 : f32
    %26 = vector.broadcast %cst_13 : f32 to vector<64x1xf32>
    %27 = arith.addf %25, %26 : vector<64x1xf32>
    %28 = math.rsqrt %27 : vector<64x1xf32>
    %c0_14 = arith.constant 0 : index
    %c0_15 = arith.constant 0 : index
    %29 = vector.load %arg3[%c0_14, %c0_15] : memref<64x64xf32, #tpu.memory_space<vmem>>, vector<64x64xf32>
    %cst_16 = arith.constant dense<0.000000e+00> : vector<64x64xf32>
    %30 = tpu.matmul %2, %29, %cst_16 {dimension_numbers = #tpu.dot_dimension_numbers<[1], [0], [0], [1], [0, 0, 1, 1], [], []>} : vector<64x64xf32>, vector<64x64xf32>, vector<64x64xf32> -> vector<64x64xf32>
    %c0_17 = arith.constant 0 : index
    %c0_18 = arith.constant 0 : index
    %31 = vector.load %arg4[%c0_17, %c0_18] : memref<64x64xf32, #tpu.memory_space<vmem>>, vector<64x64xf32>
    %cst_19 = arith.constant dense<0.000000e+00> : vector<64x64xf32>
    %32 = tpu.matmul %5, %31, %cst_19 {dimension_numbers = #tpu.dot_dimension_numbers<[1], [0], [0], [1], [0, 0, 1, 1], [], []>} : vector<64x64xf32>, vector<64x64xf32>, vector<64x64xf32> -> vector<64x64xf32>
    %33 = arith.addf %30, %32 : vector<64x64xf32>
    %34 = vector.broadcast %28 : vector<64x1xf32> to vector<64x64xf32>
    %35 = arith.mulf %33, %34 : vector<64x64xf32>
    %36 = arith.mulf %19, %28 : vector<64x1xf32>
    %c0_20 = arith.constant 0 : index
    %c0_21 = arith.constant 0 : index
    %37 = vector.load %arg5[%c0_20, %c0_21] : memref<1x64xf32, #tpu.memory_space<vmem>>, vector<1x64xf32>
    %38 = vector.broadcast %36 : vector<64x1xf32> to vector<64x64xf32>
    %39 = vector.broadcast %37 : vector<1x64xf32> to vector<64x64xf32>
    %40 = arith.mulf %38, %39 : vector<64x64xf32>
    %41 = arith.subf %35, %40 : vector<64x64xf32>
    %c0_22 = arith.constant 0 : index
    %c0_23 = arith.constant 0 : index
    %42 = vector.load %arg6[%c0_22, %c0_23] : memref<1x64xf32, #tpu.memory_space<vmem>>, vector<1x64xf32>
    %43 = vector.broadcast %42 : vector<1x64xf32> to vector<64x64xf32>
    %44 = arith.addf %41, %43 : vector<64x64xf32>
    %c0_24 = arith.constant 0 : index
    %c0_25 = arith.constant 0 : index
    %45 = vector.load %arg7[%c0_24, %c0_25] : memref<64x64xf32, #tpu.memory_space<vmem>>, vector<64x64xf32>
    tpu.vector_store %arg7[%c0_24, %c0_25], %44 {strides = array<i32>} : memref<64x64xf32, #tpu.memory_space<vmem>>, vector<64x64xf32>,
    return
  }
  func.func @transform_0(%arg0: i32) -> (i32, i32, i32, i32) {
    %c0_i32 = arith.constant 0 : i32
    %c0_i32_0 = arith.constant 0 : i32
    %c0_i32_1 = arith.constant 0 : i32
    %c0_i32_2 = arith.constant 0 : i32
    return %arg0, %c0_i32, %c0_i32_0, %c0_i32_1 : i32, i32, i32, i32
  }
  func.func @transform_1(%arg0: i32) -> (i32, i32, i32, i32) {
    %c1_i32 = arith.constant 1 : i32
    %c0_i32 = arith.constant 0 : i32
    %c0_i32_0 = arith.constant 0 : i32
    %c0_i32_1 = arith.constant 0 : i32
    return %arg0, %c1_i32, %c0_i32, %c0_i32_0 : i32, i32, i32, i32
  }
  func.func @transform_2(%arg0: i32) -> (i32, i32) {
    %c0_i32 = arith.constant 0 : i32
    %c0_i32_0 = arith.constant 0 : i32
    %c0_i32_1 = arith.constant 0 : i32
    return %c0_i32, %c0_i32_0 : i32, i32
  }
  func.func @transform_3(%arg0: i32) -> (i32, i32) {
    %c0_i32 = arith.constant 0 : i32
    %c0_i32_0 = arith.constant 0 : i32
    %c0_i32_1 = arith.constant 0 : i32
    return %c0_i32, %c0_i32_0 : i32, i32
  }
  func.func @transform_4(%arg0: i32) -> (i32, i32) {
    %c0_i32 = arith.constant 0 : i32
    %c0_i32_0 = arith.constant 0 : i32
    %c0_i32_1 = arith.constant 0 : i32
    return %c0_i32, %c0_i32_0 : i32, i32
  }
  func.func @transform_5(%arg0: i32) -> (i32, i32) {
    %c0_i32 = arith.constant 0 : i32
    %c0_i32_0 = arith.constant 0 : i32
    %c0_i32_1 = arith.constant 0 : i32
    return %c0_i32, %c0_i32_0 : i32, i32
  }
  func.func @transform_6(%arg0: i32) -> (i32, i32) {
    %c0_i32 = arith.constant 0 : i32
    %c0_i32_0 = arith.constant 0 : i32
    return %arg0, %c0_i32 : i32, i32
  }
}

</mosaic_0001>

<bundles_post_ra>
// kernel: patch_merge.1
= control target key start
LH: loop header
LB: loop body
LE: loop exit
PB: predicated region body
PF: predicated region fallthrough
CT: control target
= control target key end

     0   :  { %11 = vsyncpa [#allocation5], 0  ;;  %s1768_s0 = inlined_call_operand.vmem [shape: f32[16,2,8,64], index: 0, kind: input, shape index: {}, may-alias: {0,1}]   ;;  %s1769_s1 = inlined_call_operand.vmem [shape: f32[16,2,8,64], index: 1, kind: input, shape index: {}, may-alias: {0,1}]   ;;  %s1770_s2 = inlined_call_operand.vmem [shape: f32[64,64], index: 2, kind: input, shape index: {}]   ;;  %s1771_s3 = inlined_call_operand.vmem [shape: f32[64,64], index: 3, kind: input, shape index: {}]   ;;  %s1772_s4 = inlined_call_operand.vmem [shape: f32[1,64], index: 4, kind: input, shape index: {}]   ;;  %s1773_s5 = inlined_call_operand.vmem [shape: f32[1,64], index: 5, kind: input, shape index: {}]   ;;  %s1774_s6 = inlined_call_operand.hbm [shape: f32[128,64], index: 6, kind: output, shape index: {}]  }
   0x1   :  { %13 = vsyncpa [#allocation5 + $0x1], 0  ;;  %s1377_s21 = smov 0   ;;  %s1379_s22 = smov 0  }
   0x2   :  { %s1381_s23 = smov 0   ;;  %s1383_s24 = smov 0  }
   0x3 LB: > { %s1040_s25 = sadd.s32 4294967295, %s1337_s24   ;;  %s1041_s26 = sadd.s32 4294967294, %s1337_s24   ;;  %s1337_s24 = sphi %s1383_s24, %s1781_s24   ;;  %s1333_s23 = sphi %s1381_s23, %s1780_s23   ;;  %s1329_s22 = sphi %s1379_s22, %s1779_s22   ;;  %s1325_s21 = sphi %s1377_s21, %s1778_s21  }
   0x4   : > { %s1400_s27 = sadd.s32 1, %s1337_s24   ;;  %s26_s28 = sadd.s32 1, %s1333_s23 }
   0x5   : > { %s23_s29 = ssub.s32 %s1337_s24, %s1400_s27  ;;  %p33_p0 = scmp.ne.s32.totalorder %s1333_s23, %s1329_s22 }
   0x6   : > { %p24_p1 = scmp.eq.s32.totalorder %s23_s29, 0  ;;  %p34_p2 = scmp.eq.s32.totalorder %s1337_s24, 0 }
   0x7   : > { %p173_p3 = scmp.eq.s32.totalorder %s1040_s25, 1  ;;  %p178_p4 = scmp.ne.s32.totalorder %s1329_s22, %s1325_s21 }
   0x8   : > { %s1413_s30 = scalar_select %p24_p1, %s1333_s23, %s26_s28  }
   0x9   : > { %p1415_p5 = por %p34_p2, %p33_p0  ;;  %p1419_p6 = por %p173_p3, %p33_p0 }
   0xa   : > { %p179_p7 = scmp.eq.s32.totalorder %s1041_s26, 1  ;;  %p1043_p9 = scmp.ge.s32.totalorder %s1337_s24, 2 }
   0xc   : > { %p1423_p8 = por %p179_p7, %p178_p4  ;;  %207 = sbr.rel (%p1043_p9) target bundleno = 35 (0x23), region = 32 }
  0x13   : > { %210 = sbr.rel (!%p1415_p5) target bundleno = 27 (0x1b), region = 36  ;;  %s212_s10 = sand.u32 (%p1415_p5), 1, %s1333_s23  }
  0x14   : > { %s1087_s11 = sshll.u32 (%p1415_p5), %s1337_s24, 7  ;;  %s1044_s12 = sshll.u32 (%p1415_p5), %s212_s10, 6 }
  0x15   : > { %s218_s15 = scalar_lea.vmem (%p1415_p5), %s1768_s0, %s1087_s11  ;;  %s214_s16 = scalar_lea.vmem (%p1415_p5), [#allocation2], %s1044_s12 }
  0x16   : > { %v260_v0 = vld [vmem:[%s218_s15] sm:$0xff] (%p1415_p5)  ;;  %v262_v1 = vld [vmem:[%s218_s15 + $0x10] sm:$0xff] (%p1415_p5) }
  0x17   : > { %v264_v2 = vld [vmem:[%s218_s15 + $0x20] sm:$0xff] (%p1415_p5)  ;;  %261 = vst [vmem:[%s214_s16] sm:$0xff] (%p1415_p5), %v260_v0  ;;  %263 = vst [vmem:[%s214_s16 + $0x8] sm:$0xff] (%p1415_p5), %v262_v1  ;;  %v266_v3 = vld [vmem:[%s218_s15 + $0x30] sm:$0xff] (%p1415_p5) }
  0x18   : > { %265 = vst [vmem:[%s214_s16 + $0x10] sm:$0xff] (%p1415_p5), %v264_v2  ;;  %v268_v4 = vld [vmem:[%s218_s15 + $0x40] sm:$0xff] (%p1415_p5)  ;;  %v270_v5 = vld [vmem:[%s218_s15 + $0x50] sm:$0xff] (%p1415_p5)  ;;  %267 = vst [vmem:[%s214_s16 + $0x18] sm:$0xff] (%p1415_p5), %v266_v3 }
  0x19   : > { %269 = vst [vmem:[%s214_s16 + $0x20] sm:$0xff] (%p1415_p5), %v268_v4  ;;  %271 = vst [vmem:[%s214_s16 + $0x28] sm:$0xff] (%p1415_p5), %v270_v5  ;;  %v272_v6 = vld [vmem:[%s218_s15 + $0x60] sm:$0xff] (%p1415_p5)  ;;  %v274_v7 = vld [vmem:[%s218_s15 + $0x70] sm:$0xff] (%p1415_p5) }
  0x1a   : > { %273 = vst [vmem:[%s214_s16 + $0x30] sm:$0xff] %v272_v6  ;;  %275 = vst [vmem:[%s214_s16 + $0x38] sm:$0xff] %v274_v7 }
  0x1b PF: > { %281 = sbr.rel (!%p1415_p5) target bundleno = 35 (0x23), region = 74  ;;  %s283_s17 = sand.u32 (%p1415_p5), 1, %s1333_s23  }
  0x1c   : > { %s1088_s18 = sshll.u32 (%p1415_p5), %s1337_s24, 7  ;;  %s1048_s19 = sshll.u32 (%p1415_p5), %s283_s17, 6 }
  0x1d   : > { %s985_s28 = scalar_lea.vmem (%p1415_p5), %s1769_s1, %s1088_s18  ;;  %s285_s29 = scalar_lea.vmem (%p1415_p5), [#allocation3], %s1048_s19 }
  0x1e   : > { %v1051_v8 = vld [vmem:[%s985_s28 + $0x8] sm:$0xff] (%p1415_p5)  ;;  %v1052_v9 = vld [vmem:[%s985_s28 + $0x18] sm:$0xff] (%p1415_p5) }
  0x1f   : > { %v1053_v10 = vld [vmem:[%s985_s28 + $0x28] sm:$0xff] (%p1415_p5)  ;;  %333 = vst [vmem:[%s285_s29] sm:$0xff] (%p1415_p5), %v1051_v8  ;;  %335 = vst [vmem:[%s285_s29 + $0x8] sm:$0xff] (%p1415_p5), %v1052_v9  ;;  %v1054_v11 = vld [vmem:[%s985_s28 + $0x38] sm:$0xff] (%p1415_p5) }
  0x20   : > { %337 = vst [vmem:[%s285_s29 + $0x10] sm:$0xff] (%p1415_p5), %v1053_v10  ;;  %v1055_v12 = vld [vmem:[%s985_s28 + $0x48] sm:$0xff] (%p1415_p5)  ;;  %v1056_v13 = vld [vmem:[%s985_s28 + $0x58] sm:$0xff] (%p1415_p5)  ;;  %339 = vst [vmem:[%s285_s29 + $0x18] sm:$0xff] (%p1415_p5), %v1054_v11 }
  0x21   : > { %341 = vst [vmem:[%s285_s29 + $0x20] sm:$0xff] (%p1415_p5), %v1055_v12  ;;  %343 = vst [vmem:[%s285_s29 + $0x28] sm:$0xff] (%p1415_p5), %v1056_v13  ;;  %v1057_v14 = vld [vmem:[%s985_s28 + $0x68] sm:$0xff] (%p1415_p5)  ;;  %v1058_v15 = vld [vmem:[%s985_s28 + $0x78] sm:$0xff] (%p1415_p5) }
  0x22   : > { %345 = vst [vmem:[%s285_s29 + $0x30] sm:$0xff] %v1057_v14  ;;  %347 = vst [vmem:[%s285_s29 + $0x38] sm:$0xff] %v1058_v15 }
  0x23 PF: > { %p1059_p10 = scmp.ge.s32.totalorder %s1337_s24, 1  ;;  %p352_p11 = scmp.lt.s32.totalorder %s1337_s24, 3 }
  0x25   : > { %p353_p12 = pnand %p1059_p10, %p352_p11 }
  0x26   : > { %v611_v16 = vld [vmem:[%s1771_s3] sm:$0xff] (!%p353_p12)  ;;  %v612_v17 = vld [vmem:[%s1771_s3 + $0x8] sm:$0xff] (!%p353_p12)  ;;  %s359_s15 = sand.u32 (!%p353_p12), 1, %s1329_s22   ;;  %vm418_vm0 = vcmask (!%p353_p12), 523264   ;;  %v613_v21 = vld [vmem:[%s1771_s3 + $0x10] sm:$0xff] (!%p353_p12)  ;;  %s1339_s16 = smov (!%p353_p12), [#allocation4]  }
  0x27   : > { %356 = sbr.rel (%p353_p12) target bundleno = 306 (0x132), region = 112  ;;  %v603_v18 = vld [vmem:[%s1770_s2] sm:$0xff] (!%p353_p12)  ;;  %v1178_v19 = vpack.c.bf16 (!%p353_p12), %v612_v17, %v611_v16  ;;  %v604_v20 = vld [vmem:[%s1770_s2 + $0x8] sm:$0xff] (!%p353_p12)  ;;  %s1461_s18 = sshll.u32 (!%p353_p12), %s359_s15, 6  ;;  %v614_v22 = vld [vmem:[%s1771_s3 + $0x18] sm:$0xff] (!%p353_p12) }
  0x28   : > { %v1194_v23 = vpack.c.bf16 (!%p353_p12), %v604_v20, %v603_v18  ;;  %v1182_v24 = vpack.c.bf16 (!%p353_p12), %v614_v22, %v613_v21  ;;  %v605_v25 = vld [vmem:[%s1770_s2 + $0x10] sm:$0xff] (!%p353_p12)  ;;  %v606_v26 = vld [vmem:[%s1770_s2 + $0x18] sm:$0xff] (!%p353_p12)  ;;  %v615_v27 = vld [vmem:[%s1771_s3 + $0x20] sm:$0xff] (!%p353_p12)  ;;  %s1479_s14 = scalar_lea.vmem (!%p353_p12), [#allocation2], %s1461_s18  ;;  %s1531_s19 = scalar_lea.vmem (!%p353_p12), [#allocation3], %s1461_s18 }
  0x29   : > { %1179 = vmatprep.subr.bf16.mxu1 (!%p353_p12), %v1178_v19  ;;  %v1482_v28 = vld [vmem:[%s1479_s14 + $0x10] sm:$0xff] (!%p353_p12)  ;;  %v1485_v29 = vld [vmem:[%s1479_s14] sm:$0xff] (!%p353_p12)  ;;  %v1198_v30 = vpack.c.bf16 (!%p353_p12), %v606_v26, %v605_v25  ;;  %v1488_v31 = vld [vmem:[%s1479_s14 + $0x18] sm:$0xff] (!%p353_p12)  ;;  %s1684_s29 = scalar_lea.vmem (!%p353_p12), [#allocation4], %s1461_s18  ;;  %s1089_s18 = sshll.u32 (!%p353_p12), %s1040_s25, 10 }
  0x2a   : > { %1195 = vmatprep.subr.bf16.mxu0 (!%p353_p12), %v1194_v23  ;;  %1181 = vmatpush3.bf16.msra.mxu1 (!%p353_p12), %v1178_v19  ;;  %v425_v32 = vsel (!%p353_p12), %vm418_vm0, %v1482_v28, 0.0  ;;  %v419_v33 = vsel (!%p353_p12), %vm418_vm0, %v1485_v29, 0.0  ;;  %v1495_v34 = vld [vmem:[%s1479_s14 + $0x8] sm:$0xff] (!%p353_p12)  ;;  %v607_v36 = vld [vmem:[%s1770_s2 + $0x20] sm:$0xff] (!%p353_p12)  ;;  %v428_v38 = vsel (!%p353_p12), %vm418_vm0, %v1488_v31, 0.0  ;;  %v617_v44 = vld [vmem:[%s1771_s3 + $0x30] sm:$0xff] (!%p353_p12)  ;;  %v475_v9 = vmul.f32 (!%p353_p12), %v1485_v29, %v1485_v29  ;;  %s1715_s12 = scalar_lea.hbm (!%p353_p12), %s1774_s6, %s1089_s18 }
  0x2b   : > { %v616_v35 = vld [vmem:[%s1771_s3 + $0x28] sm:$0xff] (!%p353_p12)  ;;  %1197 = vmatpush3.bf16.msra.mxu0 (!%p353_p12), %v1194_v23  ;;  %426 = vadd.xlane.f32.xlu1 (!%p353_p12), %v425_v32  ;;  %v422_v41 = vsel (!%p353_p12), %vm418_vm0, %v1495_v34, 0.0  ;;  %v1514_v43 = vld [vmem:[%s1479_s14 + $0x20] sm:$0xff] (!%p353_p12)  ;;  %v618_v45 = vld [vmem:[%s1771_s3 + $0x38] sm:$0xff] (!%p353_p12)  ;;  %v476_v7 = vmul.f32 (!%p353_p12), %v1495_v34, %v1495_v34  ;;  %v478_v11 = vmul.f32 (!%p353_p12), %v1488_v31, %v1488_v31  ;;  %v477_v13 = vmul.f32 (!%p353_p12), %v1482_v28, %v1482_v28  ;;  %s953_s7 = sshll.u32 (!%p353_p12), %s1684_s29, 4  ;;  %s1726_s25 = scalar_lea.sflag (!%p353_p12), [#allocation5], %s359_s15  ;;  %s1717_s7 = int_to_ptr.vmem [resolvable:$true] %s953_s7 }
  0x2c   : > { %v608_v37 = vld [vmem:[%s1770_s2 + $0x28] sm:$0xff] (!%p353_p12)  ;;  %420 = vadd.xlane.f32.xlu0 (!%p353_p12), %v419_v33  ;;  %1183 = vmatprep.subr.bf16.mxu1 (!%p353_p12), %v1182_v24  ;;  %v1186_v39 = vpack.c.bf16 (!%p353_p12), %v616_v35, %v615_v27  ;;  %v609_v46 = vld [vmem:[%s1770_s2 + $0x30] sm:$0xff] (!%p353_p12)  ;;  %v610_v47 = vld [vmem:[%s1770_s2 + $0x38] sm:$0xff] (!%p353_p12)  ;;  %v1190_v50 = vpack.c.bf16 (!%p353_p12), %v618_v45, %v617_v44  ;;  %v431_v51 = vsel (!%p353_p12), %vm418_vm0, %v1514_v43, 0.0  ;;  %v483_v12 = vsel (!%p353_p12), %vm418_vm0, %v475_v9, 0.0  ;;  %s1275_s13 = scalar_lea.vmem (!%p353_p12), %s1717_s7, 1024 }
  0x2d   : > { %v1509_v40 = vld [vmem:[%s1479_s14 + $0x28] sm:$0xff] (!%p353_p12)  ;;  %1199 = vmatprep.subr.bf16.mxu0 (!%p353_p12), %v1198_v30  ;;  %v1202_v42 = vpack.c.bf16 (!%p353_p12), %v608_v37, %v607_v36  ;;  %1166 = vmatprep.mubr.msk.f32.mxu0 (!%p353_p12), %vm418_vm0, %v1485_v29  ;;  %v1534_v48 = vld [vmem:[%s1531_s19] sm:$0xff] (!%p353_p12)  ;;  %v1206_v52 = vpack.c.bf16 (!%p353_p12), %v610_v47, %v609_v46  ;;  %v1541_v53 = vld [vmem:[%s1479_s14 + $0x38] sm:$0xff] (!%p353_p12)  ;;  %v486_v10 = vsel (!%p353_p12), %vm418_vm0, %v476_v7, 0.0  ;;  %v492_v14 = vsel (!%p353_p12), %vm418_vm0, %v478_v11, 0.0  ;;  %p1276_p13 = scmp.ne.s32.totalorder (!%p353_p12), %s1717_s7, %s1275_s13  ;;  %s1279_s17 = sshll.u32 (!%p353_p12), %s1339_s16, 4  ;;  %s1280_s17 = int_to_ptr.vmem [resolvable:$false] %s1279_s17 }
  0x2e   : > { %1185 = vmatpush3.bf16.msra.mxu1 %v1182_v24  ;;  %v434_v49 = vsel %vm418_vm0, %v1509_v40, 0.0  ;;  %1138 = vmatprep.mubr.msk.f32.mxu1 %vm418_vm0, %v1534_v48  ;;  %v1546_v54 = vld [vmem:[%s1479_s14 + $0x30] sm:$0xff]  ;;  %v440_v55 = vsel %vm418_vm0, %v1541_v53, 0.0  ;;  %v411_v57 = vld [vmem:[%s1531_s19 + $0x8] sm:$0xff]  ;;  %v443_v60 = vsel %vm418_vm0, %v1534_v48, 0.0  ;;  %v413_v61 = vld [vmem:[%s1531_s19 + $0x18] sm:$0xff]  ;;  %v480_v15 = vmul.f32 %v1509_v40, %v1509_v40  ;;  %p1282_p2 = scmp.lt.s32.totalorder %s1717_s7, %s1280_s17 }
  0x2f   : > { %1201 = vmatpush3.bf16.msra.mxu0 %v1198_v30  ;;  %429 = vadd.xlane.f32.xlu1 %v428_v38  ;;  %v437_v56 = vsel %vm418_vm0, %v1546_v54, 0.0  ;;  %v1554_v58 = vld [vmem:[%s1531_s19 + $0x10] sm:$0xff]  ;;  %v446_v59 = vsel %vm418_vm0, %v411_v57, 0.0  ;;  %v414_v62 = vld [vmem:[%s1531_s19 + $0x20] sm:$0xff]  ;;  %v452_v63 = vsel %vm418_vm0, %v413_v61, 0.0  ;;  %v415_v1 = vld [vmem:[%s1531_s19 + $0x28] sm:$0xff]  ;;  %v479_v17 = vmul.f32 %v1514_v43, %v1514_v43  ;;  %p1277_p0 = pnand %p1276_p13, %p1419_p6 }
  0x30   : > { %423 = vadd.xlane.f32.xlu0 %v422_v41  ;;  %1187 = vmatprep.subr.bf16.mxu1 %v1186_v39  ;;  %v449_v0 = vsel %vm418_vm0, %v1554_v58, 0.0  ;;  %v416_v2 = vld [vmem:[%s1531_s19 + $0x30] sm:$0xff]  ;;  %v458_v3 = vsel %vm418_vm0, %v415_v1, 0.0  ;;  %v455_v4 = vsel %vm418_vm0, %v414_v62, 0.0  ;;  %v417_v5 = vld [vmem:[%s1531_s19 + $0x38] sm:$0xff]  ;;  %v489_v16 = vsel %vm418_vm0, %v477_v13, 0.0 }
  0x31   : > { %1203 = vmatprep.subr.bf16.mxu0 %v1202_v42  ;;  %v464_v6 = vsel %vm418_vm0, %v417_v5, 0.0  ;;  %v461_v8 = vsel %vm418_vm0, %v416_v2, 0.0  ;;  %v498_v18 = vsel %vm418_vm0, %v480_v15, 0.0  ;;  %v482_v19 = vmul.f32 %v1541_v53, %v1541_v53  ;;  %p1278_p1 = pneg %p1277_p0  ;;  %s1281_s19 = scalar_lea.vmem %s1280_s17, 2048 }
  0x32   : > { %1189 = vmatpush3.bf16.msra.mxu1 %v1186_v39  ;;  %v495_v20 = vsel %vm418_vm0, %v479_v17, 0.0  ;;  %v481_v21 = vmul.f32 %v1546_v54, %v1546_v54  ;;  %v508_v23 = vmul.f32 %v411_v57, %v411_v57  ;;  %v507_v25 = vmul.f32 %v1534_v48, %v1534_v48  ;;  %p1283_p3 = scmp.lt.s32.totalorder %s1281_s19, %s1275_s13 }
  0x33   : > { %1205 = vmatpush3.bf16.msra.mxu0 %v1202_v42  ;;  %435 = vadd.xlane.f32.xlu1 %v434_v49  ;;  %v504_v22 = vsel %vm418_vm0, %v482_v19, 0.0  ;;  %v510_v27 = vmul.f32 %v413_v61, %v413_v61  ;;  %v509_v29 = vmul.f32 %v1554_v58, %v1554_v58  ;;  %v511_v33 = vmul.f32 %v414_v62, %v414_v62 }
  0x34   : > { %432 = vadd.xlane.f32.xlu0 %v431_v51  ;;  %1191 = vmatprep.subr.bf16.mxu1 %v1190_v50  ;;  %v501_v24 = vsel %vm418_vm0, %v481_v21, 0.0  ;;  %v518_v26 = vsel %vm418_vm0, %v508_v23, 0.0  ;;  %v514_v35 = vmul.f32 %v417_v5, %v417_v5  ;;  %v513_v37 = vmul.f32 %v416_v2, %v416_v2  ;;  %p1284_p4 = por %p1283_p3, %p1282_p2 }
  0x35   : > { %1207 = vmatprep.subr.bf16.mxu0 %v1206_v52  ;;  %v524_v30 = vsel %vm418_vm0, %v510_v27, 0.0  ;;  %v521_v32 = vsel %vm418_vm0, %v509_v29, 0.0  ;;  %v527_v36 = vsel %vm418_vm0, %v511_v33, 0.0 }
  0x36   : > { %1193 = vmatpush3.bf16.msra.mxu1 %v1190_v50  ;;  %v536_v38 = vsel %vm418_vm0, %v514_v35, 0.0  ;;  %v533_v39 = vsel %vm418_vm0, %v513_v37, 0.0  ;;  %p1285_p5 = pnand %p1284_p4, %p1278_p1 }
  0x37   : > { %1209 = vmatpush3.bf16.msra.mxu0 %v1206_v52  ;;  %441 = vadd.xlane.f32.xlu1 %v440_v55 }
  0x38   : > { %438 = vadd.xlane.f32.xlu0 %v437_v56 }
  0x39   : > { %1139 = vmatmul.mubr.msk.f32.vlgmr.msra.gmra.mrb[0].mxu1 %vm418_vm0, %v411_v57 }
  0x3a   : > { %1167 = vmatmul.mubr.msk.f32.vlgmr.msra.gmra.mrb[0].mxu0 %vm418_vm0, %v1495_v34  ;;  %1141 = vmatprep.mubr.msk.f32.mxu1 %vm418_vm0, %v1554_v58 }
  0x3b   : > { %447 = vadd.xlane.f32.xlu1 %v446_v59  ;;  %1169 = vmatprep.mubr.msk.f32.mxu0 %vm418_vm0, %v1482_v28  ;;  %v515_v28 = vsel %vm418_vm0, %v507_v25, 0.0 }
  0x3c   : > { %444 = vadd.xlane.f32.xlu0 %v443_v60 }
  0x3d   : > { %1142 = vmatmul.mubr.msk.f32.gmra.mrb[2].mxu1 %vm418_vm0, %v413_v61 }
  0x3e   : > { %1170 = vmatmul.mubr.msk.f32.gmra.mrb[2].mxu0 %vm418_vm0, %v1488_v31  ;;  %1144 = vmatprep.mubr.msk.f32.mxu1 %vm418_vm0, %v414_v62  ;;  %v512_v31 = vmul.f32 %v415_v1, %v415_v1 }
  0x3f   : > { %453 = vadd.xlane.f32.xlu1 %v452_v63  ;;  %1172 = vmatprep.mubr.msk.f32.mxu0 %vm418_vm0, %v1514_v43 }
  0x40   : > { %450 = vadd.xlane.f32.xlu0 %v449_v0  ;;  %v530_v34 = vsel %vm418_vm0, %v512_v31, 0.0 }
  0x41   : > { %1145 = vmatmul.mubr.msk.f32.gmra.mrb[4].mxu1 %vm418_vm0, %v415_v1 }
  0x42   : > { %1173 = vmatmul.mubr.msk.f32.gmra.mrb[4].mxu0 %vm418_vm0, %v1509_v40  ;;  %1147 = vmatprep.mubr.msk.f32.mxu1 %vm418_vm0, %v416_v2 }
  0x43   : > { %459 = vadd.xlane.f32.xlu1 %v458_v3  ;;  %1175 = vmatprep.mubr.msk.f32.mxu0 %vm418_vm0, %v1546_v54 }
  0x44   : > { %456 = vadd.xlane.f32.xlu0 %v455_v4 }
  0x45   : > { %1148 = vmatmul.mubr.msk.f32.gmra.mrb[6].mxu1 %vm418_vm0, %v417_v5 }
  0x46   : > { %1176 = vmatmul.mubr.msk.f32.gmra.mrb[6].mxu0 %vm418_vm0, %v1541_v53 }
  0x47   : > { %465 = vadd.xlane.f32.xlu1 %v464_v6 }
  0x48   : > { %462 = vadd.xlane.f32.xlu0 %v461_v8 }
  0x4b   : > { %487 = vadd.xlane.f32.xlu1 %v486_v10 }
  0x4c   : > { %484 = vadd.xlane.f32.xlu0 %v483_v12 }
  0x4f   : > { %493 = vadd.xlane.f32.xlu1 %v492_v14 }
  0x50   : > { %490 = vadd.xlane.f32.xlu0 %v489_v16 }
  0x53   : > { %499 = vadd.xlane.f32.xlu1 %v498_v18 }
  0x54   : > { %496 = vadd.xlane.f32.xlu0 %v495_v20 }
  0x57   : > { %505 = vadd.xlane.f32.xlu1 %v504_v22 }
  0x58   : > { %502 = vadd.xlane.f32.xlu0 %v501_v24 }
  0x5b   : > { %519 = vadd.xlane.f32.xlu1 %v518_v26 }
  0x5c   : > { %516 = vadd.xlane.f32.xlu0 %v515_v28 }
  0x5f   : > { %525 = vadd.xlane.f32.xlu1 %v524_v30 }
  0x60   : > { %522 = vadd.xlane.f32.xlu0 %v521_v32 }
  0x63   : > { %531 = vadd.xlane.f32.xlu1 %v530_v34 }
  0x64   : > { %528 = vadd.xlane.f32.xlu0 %v527_v36 }
  0x67   : > { %537 = vadd.xlane.f32.xlu1 %v536_v38 }
  0x68   : > { %534 = vadd.xlane.f32.xlu0 %v533_v39 }
  0xb8   : > { %v427_v40 = vpop.xlane.xlu1 %426 }
  0xb9   : > { %v421_v41 = vpop.xlane.xlu0 %420 }
  0xbc   : > { %v430_v42 = vpop.xlane.xlu1 %429 }
  0xbd   : > { %v424_v43 = vpop.xlane.xlu0 %423 }
  0xc0   : > { %v436_v44 = vpop.xlane.xlu1 %435 }
  0xc1   : > { %v433_v45 = vpop.xlane.xlu0 %432 }
  0xc4   : > { %v442_v46 = vpop.xlane.xlu1 %441 }
  0xc5   : > { %v439_v47 = vpop.xlane.xlu0 %438 }
  0xc8   : > { %v448_v48 = vpop.xlane.xlu1 %447 }
  0xc9   : > { %v445_v49 = vpop.xlane.xlu0 %444  ;;  %v468_v1 = vadd.f32 %v448_v48, %v424_v43 }
  0xca   : > { %v467_v3 = vadd.f32 %v445_v49, %v421_v41 }
  0xcb   : > { %v1629_v7 = vmul.f32 0.0078125, %v468_v1 }
  0xcc   : > { %v454_v50 = vpop.xlane.xlu1 %453  ;;  %v1631_v10 = vmul.f32 0.0078125, %v467_v3 }
  0xcd   : > { %v451_v51 = vpop.xlane.xlu0 %450  ;;  %v470_v8 = vadd.f32 %v454_v50, %v430_v42  ;;  %v564_v17 = vmul.f32 %v1629_v7, %v1629_v7 }
  0xce   : > { %v469_v11 = vadd.f32 %v451_v51, %v427_v40  ;;  %v563_v21 = vmul.f32 %v1631_v10, %v1631_v10 }
  0xcf   : > { %v1635_v18 = vmul.f32 0.0078125, %v470_v8 }
  0xd0   : > { %v460_v52 = vpop.xlane.xlu1 %459  ;;  %v1639_v22 = vmul.f32 0.0078125, %v469_v11 }
  0xd1   : > { %v457_v53 = vpop.xlane.xlu0 %456  ;;  %v472_v19 = vadd.f32 %v460_v52, %v436_v44  ;;  %v566_v31 = vmul.f32 %v1635_v18, %v1635_v18 }
  0xd2   : > { %v471_v23 = vadd.f32 %v457_v53, %v433_v45  ;;  %v565_v35 = vmul.f32 %v1639_v22, %v1639_v22 }
  0xd3   : > { %v1643_v32 = vmul.f32 0.0078125, %v472_v19 }
  0xd4   : > { %v466_v54 = vpop.xlane.xlu1 %465  ;;  %v1647_v36 = vmul.f32 0.0078125, %v471_v23 }
  0xd5   : > { %v463_v55 = vpop.xlane.xlu0 %462  ;;  %v474_v33 = vadd.f32 %v466_v54, %v442_v46  ;;  %v568_v48 = vmul.f32 %v1643_v32, %v1643_v32 }
  0xd6   : > { %v473_v37 = vadd.f32 %v463_v55, %v439_v47  ;;  %v567_v46 = vmul.f32 %v1647_v36, %v1647_v36 }
  0xd7   : > { %v1651_v49 = vmul.f32 0.0078125, %v474_v33 }
  0xd8   : > { %v488_v56 = vpop.xlane.xlu1 %487  ;;  %v1655_v50 = vmul.f32 0.0078125, %v473_v37 }
  0xd9   : > { %v485_v57 = vpop.xlane.xlu0 %484 }
  0xdc   : > { %v494_v58 = vpop.xlane.xlu1 %493 }
  0xdd   : > { %v491_v59 = vpop.xlane.xlu0 %490 }
  0xe0   : > { %v500_v60 = vpop.xlane.xlu1 %499 }
  0xe1   : > { %v497_v61 = vpop.xlane.xlu0 %496 }
  0xe4   : > { %v506_v62 = vpop.xlane.xlu1 %505 }
  0xe5   : > { %v503_v63 = vpop.xlane.xlu0 %502 }
  0xe8   : > { %v520_v0 = vpop.xlane.xlu1 %519 }
  0xe9   : > { %v517_v2 = vpop.xlane.xlu0 %516  ;;  %v540_v4 = vadd.f32 %v520_v0, %v488_v56 }
  0xea   : > { %v539_v5 = vadd.f32 %v517_v2, %v485_v57 }
  0xeb   : > { %v556_v12 = vmul.f32 0.0078125, %v540_v4 }
  0xec   : > { %v526_v6 = vpop.xlane.xlu1 %525  ;;  %v555_v14 = vmul.f32 0.0078125, %v539_v5 }
  0xed   : > { %v523_v9 = vpop.xlane.xlu0 %522  ;;  %v542_v13 = vadd.f32 %v526_v6, %v494_v58  ;;  %v572_v24 = vsub.f32 %v556_v12, %v564_v17  ;;  %v570_v58 = vmul.f32 %v1651_v49, %v1651_v49 }
  0xee   : > { %v541_v15 = vadd.f32 %v523_v9, %v491_v59  ;;  %v571_v27 = vsub.f32 %v555_v14, %v563_v21  ;;  %v569_v59 = vmul.f32 %v1655_v50, %v1655_v50 }
  0xef   : > { %v558_v25 = vmul.f32 0.0078125, %v542_v13  ;;  %v580_v38 = vmax.f32 %v572_v24, 0.0 }
  0xf0   : > { %v532_v16 = vpop.xlane.xlu1 %531  ;;  %v557_v28 = vmul.f32 0.0078125, %v541_v15  ;;  %v579_v42 = vmax.f32 %v571_v27, 0.0 }
  0xf1   : > { %v529_v20 = vpop.xlane.xlu0 %528  ;;  %v544_v26 = vadd.f32 %v532_v16, %v500_v60  ;;  %v574_v39 = vsub.f32 %v558_v25, %v566_v31  ;;  %v588_v51 = vadd.f32 1e-05, %v580_v38  ;;  %v1665_v16 = vld [vmem:[%s1772_s4] ss:$0 sm:$0xff] }
  0xf2   : > { %v543_v29 = vadd.f32 %v529_v20, %v497_v61  ;;  %v573_v43 = vsub.f32 %v557_v28, %v565_v35  ;;  %v587_v54 = vadd.f32 1e-05, %v579_v42 }
  0xf3   : > { %v560_v40 = vmul.f32 0.0078125, %v544_v26  ;;  %v582_v47 = vmax.f32 %v574_v39, 0.0  ;;  %1259 = vrsqrt.f32 %v588_v51 }
  0xf4   : > { %v538_v30 = vpop.xlane.xlu1 %537  ;;  %v559_v44 = vmul.f32 0.0078125, %v543_v29  ;;  %v581_v55 = vmax.f32 %v573_v43, 0.0  ;;  %1261 = vrsqrt.f32 %v587_v54  ;;  %v1673_v29 = vld [vmem:[%s1773_s5] ss:$0 sm:$0xff] }
  0xf5   : > { %v535_v34 = vpop.xlane.xlu0 %534  ;;  %v546_v41 = vadd.f32 %v538_v30, %v506_v62  ;;  %v576_v52 = vsub.f32 %v560_v40, %v568_v48  ;;  %v590_v60 = vadd.f32 1e-05, %v582_v47 }
  0xf6   : > { %v545_v45 = vadd.f32 %v535_v34, %v503_v63  ;;  %v575_v56 = vsub.f32 %v559_v44, %v567_v46  ;;  %v589_v63 = vadd.f32 1e-05, %v581_v55 }
  0xf7   : > { %v562_v53 = vmul.f32 0.0078125, %v546_v41  ;;  %v584_v61 = vmax.f32 %v576_v52, 0.0  ;;  %1263 = vrsqrt.f32 %v590_v60 }
  0xf8   : > { %v561_v57 = vmul.f32 0.0078125, %v545_v45  ;;  %v583_v0 = vmax.f32 %v575_v56, 0.0  ;;  %1265 = vrsqrt.f32 %v589_v63 }
  0xf9   : > { %v578_v62 = vsub.f32 %v562_v53, %v570_v58  ;;  %v592_v2 = vadd.f32 1e-05, %v584_v61 }
  0xfa   : > { %v577_v1 = vsub.f32 %v561_v57, %v569_v59  ;;  %v591_v4 = vadd.f32 1e-05, %v583_v0 }
  0xfb   : > { %v586_v3 = vmax.f32 %v578_v62, 0.0  ;;  %1267 = vrsqrt.f32 %v592_v2 }
  0xfc   : > { %v585_v5 = vmax.f32 %v577_v1, 0.0  ;;  %1269 = vrsqrt.f32 %v591_v4 }
  0xfd   : > { %v594_v6 = vadd.f32 1e-05, %v586_v3  ;;  %v1260_v9 = vpop.eup %1259 }
  0xfe   : > { %v593_v8 = vadd.f32 1e-05, %v585_v5  ;;  %v1262_v11 = vpop.eup %1261  ;;  %v886_v13 = vmul.f32 %v1260_v9, %v1629_v7 }
  0xff   : > { %1271 = vrsqrt.f32 %v594_v6  ;;  %v885_v19 = vmul.f32 %v1262_v11, %v1631_v10 }
 0x100   : > { %1273 = vrsqrt.f32 %v593_v8  ;;  %v901_v26 = vmul.f32 %v1665_v16, %v886_v13 }
 0x101   : > { %v1264_v14 = vpop.eup %1263  ;;  %v900_v31 = vmul.f32 %v1665_v16, %v885_v19 }
 0x102   : > { %v1266_v20 = vpop.eup %1265  ;;  %v888_v7 = vmul.f32 %v1264_v14, %v1635_v18 }
 0x103   : > { %v887_v34 = vmul.f32 %v1266_v20, %v1639_v22 }
 0x104   : > { %v903_v43 = vmul.f32 %v1665_v16, %v888_v7 }
 0x105   : > { %v1268_v28 = vpop.eup %1267  ;;  %v902_v22 = vmul.f32 %v1665_v16, %v887_v34 }
 0x106   : > { %v1270_v35 = vpop.eup %1269  ;;  %v890_v45 = vmul.f32 %v1268_v28, %v1643_v32 }
 0x107   : > { %v889_v53 = vmul.f32 %v1270_v35, %v1647_v36 }
 0x108   : > { %v905_v36 = vmul.f32 %v1665_v16, %v890_v45 }
 0x109   : > { %v1272_v48 = vpop.eup %1271  ;;  %v904_v1 = vmul.f32 %v1665_v16, %v889_v53 }
 0x10a   : > { %v1274_v54 = vpop.eup %1273  ;;  %v892_v62 = vmul.f32 %v1272_v48, %v1651_v49 }
 0x10b   : > { %v891_v4 = vmul.f32 %v1274_v54, %v1655_v50 }
 0x10c   : > { %v1140_v12 = vpop.f32.mrb[0].mxu1  ;;  %v907_v13 = vmul.f32 %v1665_v16, %v892_v62 }
 0x10d   : > { %v1168_v15 = vpop.f32.mrb[0].mxu0  ;;  %v709_v17 = vpop.f32.mrb[1].mxu1 }
 0x10e   : > { %v844_v21 = vadd.f32 %v1168_v15, %v1140_v12  ;;  %v838_v23 = vpop.f32.mrb[1].mxu0  ;;  %v906_v15 = vmul.f32 %v1665_v16, %v891_v4 }
 0x10f   : > { %v839_v24 = vadd.f32 %v838_v23, %v709_v17 }
 0x110   : > { %v878_v25 = vmul.f32 %v1260_v9, %v844_v21  ;;  %v1143_v27 = vpop.f32.mrb[2].mxu1 }
 0x111   : > { %v877_v30 = vmul.f32 %v1262_v11, %v839_v24  ;;  %v1171_v10 = vpop.f32.mrb[2].mxu0  ;;  %v719_v33 = vpop.f32.mrb[3].mxu1 }
 0x112   : > { %v909_v37 = vsub.f32 %v878_v25, %v901_v26  ;;  %v854_v38 = vadd.f32 %v1171_v10, %v1143_v27  ;;  %v848_v39 = vpop.f32.mrb[3].mxu0 }
 0x113   : > { %v908_v40 = vsub.f32 %v877_v30, %v900_v31  ;;  %v849_v18 = vadd.f32 %v848_v39, %v719_v33 }
 0x114   : > { %v924_v41 = vadd.f32 %v1673_v29, %v909_v37  ;;  %v880_v42 = vmul.f32 %v1264_v14, %v854_v38  ;;  %v1146_v44 = vpop.f32.mrb[4].mxu1 }
 0x115   : > { %v923_v46 = vadd.f32 %v1673_v29, %v908_v40  ;;  %v879_v51 = vmul.f32 %v1266_v20, %v849_v18  ;;  %v1174_v47 = vpop.f32.mrb[4].mxu0  ;;  %v729_v52 = vpop.f32.mrb[5].mxu1 }
 0x116   : > { %932 = vst.msk [vmem:[%s1684_s29 + $0x8] sm:$0xff] %vm418_vm0, %v924_v41  ;;  %v911_v55 = vsub.f32 %v880_v42, %v903_v43  ;;  %v864_v56 = vadd.f32 %v1174_v47, %v1146_v44  ;;  %v858_v32 = vpop.f32.mrb[5].mxu0 }
 0x117   : > { %931 = vst.msk [vmem:[%s1684_s29] sm:$0xff] %vm418_vm0, %v923_v46  ;;  %v910_v57 = vsub.f32 %v879_v51, %v902_v22  ;;  %v859_v58 = vadd.f32 %v858_v32, %v729_v52 }
 0x118   : > { %v926_v59 = vadd.f32 %v1673_v29, %v911_v55  ;;  %v882_v60 = vmul.f32 %v1268_v28, %v864_v56  ;;  %v1149_v61 = vpop.f32.mrb[6].mxu1 }
 0x119   : > { %v925_v63 = vadd.f32 %v1673_v29, %v910_v57  ;;  %v881_v0 = vmul.f32 %v1270_v35, %v859_v58  ;;  %v1177_v2 = vpop.f32.mrb[6].mxu0  ;;  %v739_v3 = vpop.f32.mrb[7].mxu1 }
 0x11a   : > { %934 = vst.msk [vmem:[%s1684_s29 + $0x18] sm:$0xff] %vm418_vm0, %v926_v59  ;;  %v913_v5 = vsub.f32 %v882_v60, %v905_v36  ;;  %v874_v6 = vadd.f32 %v1177_v2, %v1149_v61  ;;  %v868_v8 = vpop.f32.mrb[7].mxu0 }
 0x11b   : > { %933 = vst.msk [vmem:[%s1684_s29 + $0x10] sm:$0xff] %vm418_vm0, %v925_v63  ;;  %v912_v49 = vsub.f32 %v881_v0, %v904_v1  ;;  %v869_v9 = vadd.f32 %v868_v8, %v739_v3 }
 0x11c   : > { %v928_v11 = vadd.f32 %v1673_v29, %v913_v5  ;;  %v884_v12 = vmul.f32 %v1272_v48, %v874_v6 }
 0x11d   : > { %v927_v50 = vadd.f32 %v1673_v29, %v912_v49  ;;  %v883_v14 = vmul.f32 %v1274_v54, %v869_v9 }
 0x11e   : > { %936 = vst.msk [vmem:[%s1684_s29 + $0x28] sm:$0xff] %vm418_vm0, %v928_v11  ;;  %v915_v17 = vsub.f32 %v884_v12, %v907_v13 }
 0x11f   : > { %935 = vst.msk [vmem:[%s1684_s29 + $0x20] sm:$0xff] %vm418_vm0, %v927_v50  ;;  %v914_v19 = vsub.f32 %v883_v14, %v906_v15 }
 0x120   : > { %v930_v20 = vadd.f32 %v1673_v29, %v915_v17 }
 0x121   : > { %v929_v16 = vadd.f32 %v1673_v29, %v914_v19 }
 0x122   : > { %938 = vst.msk [vmem:[%s1684_s29 + $0x38] sm:$0xff] %vm418_vm0, %v930_v20 }
 0x123   : > { %937 = vst.msk [vmem:[%s1684_s29 + $0x30] sm:$0xff] %vm418_vm0, %v929_v16 }
 0x124   : > { %1288 = shalt.err (!%p1285_p5)
}
 0x125   : > { %s1289_s15 = scalar_lea.hbm %s1715_s12, 1024  ;;  %s1293_s26 = scalar_lea.hbm %s1774_s6, 2048 }
 0x126   : > { %p1290_p7 = scmp.ne.s32.totalorder %s1715_s12, %s1289_s15  ;;  %p1294_p12 = scmp.lt.u32.totalorder %s1715_s12, %s1774_s6 }
 0x127   : > { %p1295_p13 = scmp.lt.u32.totalorder %s1293_s26, %s1289_s15  ;;  %p1297_p1 = scmp.lt.u32.totalorder %s1289_s15, %s1715_s12 }
 0x128   : > { %p1291_p10 = pnand %p1290_p7, %p1419_p6 }
 0x129   : > { %p1296_p0 = por %p1295_p13, %p1294_p12 }
 0x12a   : > { %p1292_p11 = pneg %p1291_p10 }
 0x12b   : > { %p1298_p2 = por %p1297_p1, %p1296_p0 }
 0x12d   : > { %p1299_p3 = pnand %p1298_p2, %p1292_p11 }
 0x12f   : > { %1302 = shalt.err (!%p1299_p3)
}
 0x130   : > { %s1340_s18 = smov 128   ;;  %s1341_s10 = smov 8  }
 0x131   : > { %1218 = dma.vmem_to_hbm [thread:$0]  (%p1419_p6), %s1717_s7, 1024, %s1715_s12, %s1726_s25, %s1340_s18, %s1340_s18, %s1341_s10  }
 0x132 PF: > { %s968_s11 = sand.u32 1, %s1325_s21   ;;  %p1221_p4 = pnand %p1043_p9, %p1423_p8 }
 0x133   : > { %s969_s13 = scalar_lea.sflag [#allocation5], %s968_s11 }
 0x134   : > { %1320 = dma.done.wait (!%p1221_p4), %s969_s13, 1024  }
 0x135   : > { %1322 = vsyncadd (!%p1221_p4), %s969_s13, 4294966272  ;;  %p16_p5 = scmp.ge.s32.totalorder %s1400_s27, 4   ;;  %s1778_s21 = smov %s1329_s22 }
 0x136   : > { %s1779_s22 = smov %s1333_s23  ;;  %s1780_s23 = smov %s1413_s30 }
 0x137   : > { %s1781_s24 = smov %s1400_s27  ;;  %18 = sbr.rel (!%p16_p5) target bundleno = 3 (0x3), region = 168 }
 0x13e   :  { %974 = vsyncpa [#allocation5], 1 }
 0x13f   :  { %976 = vsyncpa [#allocation5 + $0x1], 1 }

</bundles_post_ra>
